<compile_context>
chip_gen: v6e
topology: v6e:2x2x1
jax: 0.10.0
libtpu: 0.0.40
codegen_flags: <defaults>
</compile_context>

<pallas_src>
import math
from functools import partial

import jax
import jax.numpy as jnp
from jax.experimental import pallas as pl
from jax.experimental.pallas import tpu as pltpu


# ----------------------------------------------------------------------------
# Fused SnailLayer kernel: dense-block chain (gated dilated conv + residual +
# TF LayerNorm) followed by the attention block, per batch element.
# ----------------------------------------------------------------------------
def _snail_kernel(x_ref, mask_ref, wconv_ref, bconv_ref, gamma_ref, beta_ref,
                  wqkv_ref, bqkv_ref, o_ref, *, dilations, eps, scale):
    _, S, H = x_ref.shape
    x = x_ref[0].astype(jnp.float32)                      # [S, H] resident activation

    # ---------------- dense-block chain (statically unrolled, ~log2(S) blocks) --
    for i, d in enumerate(dilations):                     # d, S are Python ints
        xb = x.astype(jnp.bfloat16)                       # matmul operand dtype

        # Fused gated conv: per-tap weight is [H, 2H] = [filter || gate].
        # Center tap (t) is a full matmul; shifted taps (t-d, t+d) are partial
        # matmuls over the valid rows only (skipped entirely when d >= S).
        acc = jnp.dot(xb, wconv_ref[i, 1], preferred_element_type=jnp.float32)
        if d < S:
            # x[t+d] tap -> contributes to output rows [0, S-d)
            tap_p = jnp.dot(xb[d:], wconv_ref[i, 2],
                            preferred_element_type=jnp.float32)
            # x[t-d] tap -> contributes to output rows [d, S)
            tap_m = jnp.dot(xb[:S - d], wconv_ref[i, 0],
                            preferred_element_type=jnp.float32)
            zpad = jnp.zeros((d, 2 * H), jnp.float32)
            acc = acc + jnp.concatenate([tap_p, zpad], axis=0) \
                      + jnp.concatenate([zpad, tap_m], axis=0)
        acc = acc + bconv_ref[i]                          # [1, 2H] broadcast

        xf = acc[:, :H]                                   # filter conv output
        xg = acc[:, H:]                                   # gate conv output
        y = x + jnp.tanh(xf) * jax.nn.sigmoid(xg)         # residual + gated act

        # TF-style LayerNorm over hidden (biased variance, eps inside sqrt).
        u = jnp.mean(y, axis=-1, keepdims=True)
        yc = y - u
        s = jnp.mean(yc * yc, axis=-1, keepdims=True)
        x = gamma_ref[i] * (yc * jax.lax.rsqrt(s + eps)) + beta_ref[i]

    # ---------------- attention block ------------------------------------------
    xb = x.astype(jnp.bfloat16)
    qkv = jnp.dot(xb, wqkv_ref[...],
                  preferred_element_type=jnp.float32) + bqkv_ref[...]   # [S, 3H]
    q = (qkv[:, :H] * scale).astype(jnp.bfloat16)         # fold 1/sqrt(key) into q
    k = qkv[:, H:2 * H].astype(jnp.bfloat16)
    v = qkv[:, 2 * H:].astype(jnp.bfloat16)

    # scores[i, j] = sum_h q[i,h] * k[j,h]          (already scaled via q)
    scores = jax.lax.dot_general(q, k, (((1,), (1,)), ((), ())),
                                 preferred_element_type=jnp.float32)    # [S, S]
    m = mask_ref[0].astype(jnp.float32)                   # [1, S]
    # reference: (qk^T + (1-m)*-1e6) / sqrt(key)  ==  scaled_qk + (1-m)*(-1e6*scale)
    scores = scores + (1.0 - m) * (-1000000.0 * scale)

    # Reference uses F.softmax(..., dim=1) on [B, Sq, Sk] -> softmax over the
    # QUERY axis, i.e. axis 0 of the per-batch [Sq, Sk] matrix.
    mx = jnp.max(scores, axis=0, keepdims=True)
    e = jnp.exp(scores - mx)
    p = e * pl.reciprocal(jnp.sum(e, axis=0, keepdims=True), approx=True)

    self_out = jnp.dot(p.astype(jnp.bfloat16), v,
                       preferred_element_type=jnp.float32)              # [S, H]

    # Output: concat(input, self_output) along hidden.
    if H % 128 == 0:
        # lane-aligned -> write both halves directly, no [S, 2H] temp
        o_ref[0, :, :H] = x.astype(o_ref.dtype)
        o_ref[0, :, H:] = self_out.astype(o_ref.dtype)
    else:
        # tiny / unaligned hidden sizes: safe single full-tile store
        o_ref[0] = jnp.concatenate([x, self_out], axis=-1).astype(o_ref.dtype)


# ----------------------------------------------------------------------------
# Wrapper: one pallas_call for the whole layer.
# ----------------------------------------------------------------------------
def snail_layer_forward(hidden_states, attention_mask, params):
    x = hidden_states                                     # [B, S, H]
    B, S, H = x.shape
    mask3 = attention_mask.reshape(B, 1, S).astype(jnp.float32)

    kernel = partial(_snail_kernel,
                     dilations=params["dilations"],
                     eps=1e-12,
                     scale=1.0 / math.sqrt(params["key_size"]))

    def full(arr):
        nd = arr.ndim
        return pl.BlockSpec(arr.shape, lambda b: (0,) * nd)

    # Conservative VMEM budget: weights (block index never changes) + a few f32
    # activation tiles; clamped to fit every TPU generation's physical VMEM.
    weight_bytes = sum(int(a.size) * a.dtype.itemsize for a in
                       (params["wconv"], params["bconv"], params["gamma"],
                        params["beta"], params["wqkv"], params["bqkv"]))
    act_bytes = 4 * (8 * S * H + 2 * S * S + 3 * S * H)   # rough per-step working set
    vmem_limit = int(min(max(2 * weight_bytes + 4 * act_bytes, 32 * 2**20),
                         56 * 2**20))

    return pl.pallas_call(
        kernel,
        out_shape=jax.ShapeDtypeStruct((B, S, 2 * H), x.dtype),
        grid=(B,),
        in_specs=[
            pl.BlockSpec((1, S, H), lambda b: (b, 0, 0)),      # activation
            pl.BlockSpec((1, 1, S), lambda b: (b, 0, 0)),      # attention mask
            full(params["wconv"]), full(params["bconv"]),
            full(params["gamma"]), full(params["beta"]),
            full(params["wqkv"]), full(params["bqkv"]),
        ],
        out_specs=pl.BlockSpec((1, S, 2 * H), lambda b: (b, 0, 0)),
        compiler_params=pltpu.CompilerParams(
            dimension_semantics=("parallel",),
            vmem_limit_bytes=vmem_limit),
    )(x, mask3, params["wconv"], params["bconv"], params["gamma"],
      params["beta"], params["wqkv"], params["bqkv"])


# ----------------------------------------------------------------------------
# Parameter init (fused layouts).
#   wconv[i, k, :, :H]  : block i, tap k (t-d, t, t+d) weights of causalconv1 (filter)
#   wconv[i, k, :, H:]  : same for causalconv2 (gate)        (torch weight[o,i,k].T)
#   wqkv[:, :H]/[H:2H]/[2H:] : q / k / v linear weights       (torch weight.T)
# ----------------------------------------------------------------------------
def init_params(key, hidden_size, seq_length):
    H = hidden_size
    n_blocks = int(math.ceil(math.log(seq_length + 1, 2)))
    conv_scale = 1.0 / math.sqrt(3 * H)
    lin_scale = 1.0 / math.sqrt(H)

    kw, kb, kq, kbq = jax.random.split(key, 4)
    wconv = jax.random.uniform(kw, (n_blocks, 3, H, 2 * H), jnp.float32,
                               -conv_scale, conv_scale)
    bconv = jax.random.uniform(kb, (n_blocks, 1, 2 * H), jnp.float32,
                               -conv_scale, conv_scale)
    wqkv = jax.random.uniform(kq, (H, 3 * H), jnp.float32, -lin_scale, lin_scale)
    bqkv = jax.random.uniform(kbq, (1, 3 * H), jnp.float32, -lin_scale, lin_scale)

    return {
        "wconv": wconv.astype(jnp.bfloat16),    # bf16 weights: half the HBM/VMEM traffic
        "bconv": bconv,                         # biases / norm params stay f32
        "gamma": jnp.ones((n_blocks, 1, H), jnp.float32),
        "beta": jnp.zeros((n_blocks, 1, H), jnp.float32),
        "wqkv": wqkv.astype(jnp.bfloat16),
        "bqkv": bqkv,
        "dilations": tuple(2 ** (i + 1) for i in range(n_blocks)),  # static ints
        "key_size": H,
    }


if __name__ == "__main__":
    B, S, H = 2, 8, 32
    key = jax.random.PRNGKey(0)
    key, kx = jax.random.split(key)
    hidden_states = jax.random.normal(kx, (B, S, H), jnp.float32)
    attention_mask = jnp.ones((B, S), jnp.float32)
    attention_mask = attention_mask.at[1, -2:].set(0.0)   # some padding in batch 1

    params = init_params(key, H, S)
    out = snail_layer_forward(hidden_states, attention_mask, params)
    out = jax.block_until_ready(out)
    assert out.shape == (B, S, 2 * H), out.shape
    assert bool(jnp.all(jnp.isfinite(out)))
    print("KERNEL_OK")
</pallas_src>

<mosaic_0001>
module attributes {stable_mosaic.version = 11 : i64} {
  func.func @_snail_kernel(%arg0: i32, %arg1: memref<1x8x32xf32, #tpu.memory_space<vmem>>, %arg2: memref<1x1x8xf32, #tpu.memory_space<vmem>>, %arg3: memref<4x3x32x64xbf16, #tpu.memory_space<vmem>>, %arg4: memref<4x1x64xf32, #tpu.memory_space<vmem>>, %arg5: memref<4x1x32xf32, #tpu.memory_space<vmem>>, %arg6: memref<4x1x32xf32, #tpu.memory_space<vmem>>, %arg7: memref<32x96xbf16, #tpu.memory_space<vmem>>, %arg8: memref<1x96xf32, #tpu.memory_space<vmem>>, %arg9: memref<1x8x64xf32, #tpu.memory_space<vmem>>) attributes {dimension_semantics = [#tpu.dimension_semantics<parallel>], iteration_bounds = array<i64: 2>, scalar_prefetch = 0 : i64, scratch_operands = 0 : i64, tpu.core_type = #tpu.core_type<tc>, window_params = [{transform_indices = @transform_0, window_bounds = array<i64: 1, 8, 32>}, {transform_indices = @transform_1, window_bounds = array<i64: 1, 1, 8>}, {pipeline_mode = #tpu.pipeline_mode<synchronous>, transform_indices = @transform_2, window_bounds = array<i64: 4, 3, 32, 64>}, {pipeline_mode = #tpu.pipeline_mode<synchronous>, transform_indices = @transform_3, window_bounds = array<i64: 4, 1, 64>}, {pipeline_mode = #tpu.pipeline_mode<synchronous>, transform_indices = @transform_4, window_bounds = array<i64: 4, 1, 32>}, {pipeline_mode = #tpu.pipeline_mode<synchronous>, transform_indices = @transform_5, window_bounds = array<i64: 4, 1, 32>}, {pipeline_mode = #tpu.pipeline_mode<synchronous>, transform_indices = @transform_6, window_bounds = array<i64: 32, 96>}, {pipeline_mode = #tpu.pipeline_mode<synchronous>, transform_indices = @transform_7, window_bounds = array<i64: 1, 96>}, {transform_indices = @transform_8, window_bounds = array<i64: 1, 8, 64>}]} {
    %c0 = arith.constant 0 : index
    %c0_0 = arith.constant 0 : index
    %c0_1 = arith.constant 0 : index
    %0 = vector.load %arg1[%c0, %c0_0, %c0_1] : memref<1x8x32xf32, #tpu.memory_space<vmem>>, vector<1x8x32xf32>
    %1 = vector.shape_cast %0 : vector<1x8x32xf32> to vector<8x32xf32>
    %2 = arith.truncf %1 : vector<8x32xf32> to vector<8x32xbf16>
    %c0_2 = arith.constant 0 : index
    %c1 = arith.constant 1 : index
    %c0_3 = arith.constant 0 : index
    %c0_4 = arith.constant 0 : index
    %3 = vector.load %arg3[%c0_2, %c1, %c0_3, %c0_4] : memref<4x3x32x64xbf16, #tpu.memory_space<vmem>>, vector<1x1x32x64xbf16>
    %4 = vector.shape_cast %3 : vector<1x1x32x64xbf16> to vector<32x64xbf16>
    %cst = arith.constant dense<0.000000e+00> : vector<8x64xf32>
    %5 = tpu.matmul %2, %4, %cst {dimension_numbers = #tpu.dot_dimension_numbers<[1], [0], [0], [1], [0, 0, 1, 1], [], []>} : vector<8x32xbf16>, vector<32x64xbf16>, vector<8x64xf32> -> vector<8x64xf32>
    %6 = vector.extract_strided_slice %2 {offsets = [2, 0], sizes = [6, 32], strides = [1, 1]} : vector<8x32xbf16> to vector<6x32xbf16>
    %c0_5 = arith.constant 0 : index
    %c2 = arith.constant 2 : index
    %c0_6 = arith.constant 0 : index
    %c0_7 = arith.constant 0 : index
    %7 = vector.load %arg3[%c0_5, %c2, %c0_6, %c0_7] : memref<4x3x32x64xbf16, #tpu.memory_space<vmem>>, vector<1x1x32x64xbf16>
    %8 = vector.shape_cast %7 : vector<1x1x32x64xbf16> to vector<32x64xbf16>
    %cst_8 = arith.constant dense<0.000000e+00> : vector<6x64xf32>
    %9 = tpu.matmul %6, %8, %cst_8 {dimension_numbers = #tpu.dot_dimension_numbers<[1], [0], [0], [1], [0, 0, 1, 1], [], []>} : vector<6x32xbf16>, vector<32x64xbf16>, vector<6x64xf32> -> vector<6x64xf32>
    %10 = vector.extract_strided_slice %2 {offsets = [0, 0], sizes = [6, 32], strides = [1, 1]} : vector<8x32xbf16> to vector<6x32xbf16>
    %c0_9 = arith.constant 0 : index
    %c0_10 = arith.constant 0 : index
    %c0_11 = arith.constant 0 : index
    %c0_12 = arith.constant 0 : index
    %11 = vector.load %arg3[%c0_9, %c0_10, %c0_11, %c0_12] : memref<4x3x32x64xbf16, #tpu.memory_space<vmem>>, vector<1x1x32x64xbf16>
    %12 = vector.shape_cast %11 : vector<1x1x32x64xbf16> to vector<32x64xbf16>
    %cst_13 = arith.constant dense<0.000000e+00> : vector<6x64xf32>
    %13 = tpu.matmul %10, %12, %cst_13 {dimension_numbers = #tpu.dot_dimension_numbers<[1], [0], [0], [1], [0, 0, 1, 1], [], []>} : vector<6x32xbf16>, vector<32x64xbf16>, vector<6x64xf32> -> vector<6x64xf32>
    %cst_14 = arith.constant 0.000000e+00 : f32
    %14 = vector.broadcast %cst_14 : f32 to vector<2x64xf32>
    %15 = tpu.concatenate %9, %14 in 0 : vector<6x64xf32>, vector<2x64xf32> -> vector<8x64xf32>
    %16 = arith.addf %5, %15 : vector<8x64xf32>
    %17 = tpu.concatenate %14, %13 in 0 : vector<2x64xf32>, vector<6x64xf32> -> vector<8x64xf32>
    %18 = arith.addf %16, %17 : vector<8x64xf32>
    %c0_15 = arith.constant 0 : index
    %c0_16 = arith.constant 0 : index
    %c0_17 = arith.constant 0 : index
    %19 = vector.load %arg4[%c0_15, %c0_16, %c0_17] : memref<4x1x64xf32, #tpu.memory_space<vmem>>, vector<1x1x64xf32>
    %20 = vector.shape_cast %19 : vector<1x1x64xf32> to vector<1x64xf32>
    %21 = vector.broadcast %20 : vector<1x64xf32> to vector<8x64xf32>
    %22 = arith.addf %18, %21 : vector<8x64xf32>
    %23 = vector.extract_strided_slice %22 {offsets = [0, 0], sizes = [8, 32], strides = [1, 1]} : vector<8x64xf32> to vector<8x32xf32>
    %24 = vector.extract_strided_slice %22 {offsets = [0, 32], sizes = [8, 32], strides = [1, 1]} : vector<8x64xf32> to vector<8x32xf32>
    %25 = math.tanh %23 : vector<8x32xf32>
    %26 = arith.negf %24 : vector<8x32xf32>
    %27 = math.exp %26 : vector<8x32xf32>
    %cst_18 = arith.constant 1.000000e+00 : f32
    %28 = vector.broadcast %cst_18 : f32 to vector<8x32xf32>
    %29 = arith.addf %28, %27 : vector<8x32xf32>
    %30 = arith.divf %28, %29 : vector<8x32xf32>
    %31 = arith.mulf %25, %30 : vector<8x32xf32>
    %32 = arith.addf %1, %31 : vector<8x32xf32>
    %cst_19 = arith.constant dense<0.000000e+00> : vector<8xf32>
    %33 = vector.multi_reduction <add>, %32, %cst_19 [1] : vector<8x32xf32> to vector<8xf32>
    %34 = vector.shape_cast %33 : vector<8xf32> to vector<8x1xf32>
    %cst_20 = arith.constant 3.200000e+01 : f32
    %35 = vector.broadcast %cst_20 : f32 to vector<8x1xf32>
    %36 = arith.divf %34, %35 : vector<8x1xf32>
    %37 = vector.broadcast %36 : vector<8x1xf32> to vector<8x32xf32>
    %38 = arith.subf %32, %37 : vector<8x32xf32>
    %39 = arith.mulf %38, %38 : vector<8x32xf32>
    %cst_21 = arith.constant dense<0.000000e+00> : vector<8xf32>
    %40 = vector.multi_reduction <add>, %39, %cst_21 [1] : vector<8x32xf32> to vector<8xf32>
    %41 = vector.shape_cast %40 : vector<8xf32> to vector<8x1xf32>
    %cst_22 = arith.constant 3.200000e+01 : f32
    %42 = vector.broadcast %cst_22 : f32 to vector<8x1xf32>
    %43 = arith.divf %41, %42 : vector<8x1xf32>
    %c0_23 = arith.constant 0 : index
    %c0_24 = arith.constant 0 : index
    %c0_25 = arith.constant 0 : index
    %44 = vector.load %arg5[%c0_23, %c0_24, %c0_25] : memref<4x1x32xf32, #tpu.memory_space<vmem>>, vector<1x1x32xf32>
    %45 = vector.shape_cast %44 : vector<1x1x32xf32> to vector<1x32xf32>
    %cst_26 = arith.constant 9.99999996E-13 : f32
    %46 = vector.broadcast %cst_26 : f32 to vector<8x1xf32>
    %47 = arith.addf %43, %46 : vector<8x1xf32>
    %48 = math.rsqrt %47 : vector<8x1xf32>
    %49 = vector.broadcast %48 : vector<8x1xf32> to vector<8x32xf32>
    %50 = arith.mulf %38, %49 : vector<8x32xf32>
    %51 = vector.broadcast %45 : vector<1x32xf32> to vector<8x32xf32>
    %52 = arith.mulf %51, %50 : vector<8x32xf32>
    %c0_27 = arith.constant 0 : index
    %c0_28 = arith.constant 0 : index
    %c0_29 = arith.constant 0 : index
    %53 = vector.load %arg6[%c0_27, %c0_28, %c0_29] : memref<4x1x32xf32, #tpu.memory_space<vmem>>, vector<1x1x32xf32>
    %54 = vector.shape_cast %53 : vector<1x1x32xf32> to vector<1x32xf32>
    %55 = vector.broadcast %54 : vector<1x32xf32> to vector<8x32xf32>
    %56 = arith.addf %52, %55 : vector<8x32xf32>
    %57 = arith.truncf %56 : vector<8x32xf32> to vector<8x32xbf16>
    %c1_30 = arith.constant 1 : index
    %c1_31 = arith.constant 1 : index
    %c0_32 = arith.constant 0 : index
    %c0_33 = arith.constant 0 : index
    %58 = vector.load %arg3[%c1_30, %c1_31, %c0_32, %c0_33] : memref<4x3x32x64xbf16, #tpu.memory_space<vmem>>, vector<1x1x32x64xbf16>
    %59 = vector.shape_cast %58 : vector<1x1x32x64xbf16> to vector<32x64xbf16>
    %cst_34 = arith.constant dense<0.000000e+00> : vector<8x64xf32>
    %60 = tpu.matmul %57, %59, %cst_34 {dimension_numbers = #tpu.dot_dimension_numbers<[1], [0], [0], [1], [0, 0, 1, 1], [], []>} : vector<8x32xbf16>, vector<32x64xbf16>, vector<8x64xf32> -> vector<8x64xf32>
    %61 = vector.extract_strided_slice %57 {offsets = [4, 0], sizes = [4, 32], strides = [1, 1]} : vector<8x32xbf16> to vector<4x32xbf16>
    %c1_35 = arith.constant 1 : index
    %c2_36 = arith.constant 2 : index
    %c0_37 = arith.constant 0 : index
    %c0_38 = arith.constant 0 : index
    %62 = vector.load %arg3[%c1_35, %c2_36, %c0_37, %c0_38] : memref<4x3x32x64xbf16, #tpu.memory_space<vmem>>, vector<1x1x32x64xbf16>
    %63 = vector.shape_cast %62 : vector<1x1x32x64xbf16> to vector<32x64xbf16>
    %cst_39 = arith.constant dense<0.000000e+00> : vector<4x64xf32>
    %64 = tpu.matmul %61, %63, %cst_39 {dimension_numbers = #tpu.dot_dimension_numbers<[1], [0], [0], [1], [0, 0, 1, 1], [], []>} : vector<4x32xbf16>, vector<32x64xbf16>, vector<4x64xf32> -> vector<4x64xf32>
    %65 = vector.extract_strided_slice %57 {offsets = [0, 0], sizes = [4, 32], strides = [1, 1]} : vector<8x32xbf16> to vector<4x32xbf16>
    %c1_40 = arith.constant 1 : index
    %c0_41 = arith.constant 0 : index
    %c0_42 = arith.constant 0 : index
    %c0_43 = arith.constant 0 : index
    %66 = vector.load %arg3[%c1_40, %c0_41, %c0_42, %c0_43] : memref<4x3x32x64xbf16, #tpu.memory_space<vmem>>, vector<1x1x32x64xbf16>
    %67 = vector.shape_cast %66 : vector<1x1x32x64xbf16> to vector<32x64xbf16>
    %cst_44 = arith.constant dense<0.000000e+00> : vector<4x64xf32>
    %68 = tpu.matmul %65, %67, %cst_44 {dimension_numbers = #tpu.dot_dimension_numbers<[1], [0], [0], [1], [0, 0, 1, 1], [], []>} : vector<4x32xbf16>, vector<32x64xbf16>, vector<4x64xf32> -> vector<4x64xf32>
    %cst_45 = arith.constant 0.000000e+00 : f32
    %69 = vector.broadcast %cst_45 : f32 to vector<4x64xf32>
    %70 = tpu.concatenate %64, %69 in 0 : vector<4x64xf32>, vector<4x64xf32> -> vector<8x64xf32>
    %71 = arith.addf %60, %70 : vector<8x64xf32>
    %72 = tpu.concatenate %69, %68 in 0 : vector<4x64xf32>, vector<4x64xf32> -> vector<8x64xf32>
    %73 = arith.addf %71, %72 : vector<8x64xf32>
    %c1_46 = arith.constant 1 : index
    %c0_47 = arith.constant 0 : index
    %c0_48 = arith.constant 0 : index
    %74 = vector.load %arg4[%c1_46, %c0_47, %c0_48] : memref<4x1x64xf32, #tpu.memory_space<vmem>>, vector<1x1x64xf32>
    %75 = vector.shape_cast %74 : vector<1x1x64xf32> to vector<1x64xf32>
    %76 = vector.broadcast %75 : vector<1x64xf32> to vector<8x64xf32>
    %77 = arith.addf %73, %76 : vector<8x64xf32>
    %78 = vector.extract_strided_slice %77 {offsets = [0, 0], sizes = [8, 32], strides = [1, 1]} : vector<8x64xf32> to vector<8x32xf32>
    %79 = vector.extract_strided_slice %77 {offsets = [0, 32], sizes = [8, 32], strides = [1, 1]} : vector<8x64xf32> to vector<8x32xf32>
    %80 = math.tanh %78 : vector<8x32xf32>
    %81 = arith.negf %79 : vector<8x32xf32>
    %82 = math.exp %81 : vector<8x32xf32>
    %cst_49 = arith.constant 1.000000e+00 : f32
    %83 = vector.broadcast %cst_49 : f32 to vector<8x32xf32>
    %84 = arith.addf %83, %82 : vector<8x32xf32>
    %85 = arith.divf %83, %84 : vector<8x32xf32>
    %86 = arith.mulf %80, %85 : vector<8x32xf32>
    %87 = arith.addf %56, %86 : vector<8x32xf32>
    %cst_50 = arith.constant dense<0.000000e+00> : vector<8xf32>
    %88 = vector.multi_reduction <add>, %87, %cst_50 [1] : vector<8x32xf32> to vector<8xf32>
    %89 = vector.shape_cast %88 : vector<8xf32> to vector<8x1xf32>
    %cst_51 = arith.constant 3.200000e+01 : f32
    %90 = vector.broadcast %cst_51 : f32 to vector<8x1xf32>
    %91 = arith.divf %89, %90 : vector<8x1xf32>
    %92 = vector.broadcast %91 : vector<8x1xf32> to vector<8x32xf32>
    %93 = arith.subf %87, %92 : vector<8x32xf32>
    %94 = arith.mulf %93, %93 : vector<8x32xf32>
    %cst_52 = arith.constant dense<0.000000e+00> : vector<8xf32>
    %95 = vector.multi_reduction <add>, %94, %cst_52 [1] : vector<8x32xf32> to vector<8xf32>
    %96 = vector.shape_cast %95 : vector<8xf32> to vector<8x1xf32>
    %cst_53 = arith.constant 3.200000e+01 : f32
    %97 = vector.broadcast %cst_53 : f32 to vector<8x1xf32>
    %98 = arith.divf %96, %97 : vector<8x1xf32>
    %c1_54 = arith.constant 1 : index
    %c0_55 = arith.constant 0 : index
    %c0_56 = arith.constant 0 : index
    %99 = vector.load %arg5[%c1_54, %c0_55, %c0_56] : memref<4x1x32xf32, #tpu.memory_space<vmem>>, vector<1x1x32xf32>
    %100 = vector.shape_cast %99 : vector<1x1x32xf32> to vector<1x32xf32>
    %cst_57 = arith.constant 9.99999996E-13 : f32
    %101 = vector.broadcast %cst_57 : f32 to vector<8x1xf32>
    %102 = arith.addf %98, %101 : vector<8x1xf32>
    %103 = math.rsqrt %102 : vector<8x1xf32>
    %104 = vector.broadcast %103 : vector<8x1xf32> to vector<8x32xf32>
    %105 = arith.mulf %93, %104 : vector<8x32xf32>
    %106 = vector.broadcast %100 : vector<1x32xf32> to vector<8x32xf32>
    %107 = arith.mulf %106, %105 : vector<8x32xf32>
    %c1_58 = arith.constant 1 : index
    %c0_59 = arith.constant 0 : index
    %c0_60 = arith.constant 0 : index
    %108 = vector.load %arg6[%c1_58, %c0_59, %c0_60] : memref<4x1x32xf32, #tpu.memory_space<vmem>>, vector<1x1x32xf32>
    %109 = vector.shape_cast %108 : vector<1x1x32xf32> to vector<1x32xf32>
    %110 = vector.broadcast %109 : vector<1x32xf32> to vector<8x32xf32>
    %111 = arith.addf %107, %110 : vector<8x32xf32>
    %112 = arith.truncf %111 : vector<8x32xf32> to vector<8x32xbf16>
    %c2_61 = arith.constant 2 : index
    %c1_62 = arith.constant 1 : index
    %c0_63 = arith.constant 0 : index
    %c0_64 = arith.constant 0 : index
    %113 = vector.load %arg3[%c2_61, %c1_62, %c0_63, %c0_64] : memref<4x3x32x64xbf16, #tpu.memory_space<vmem>>, vector<1x1x32x64xbf16>
    %114 = vector.shape_cast %113 : vector<1x1x32x64xbf16> to vector<32x64xbf16>
    %cst_65 = arith.constant dense<0.000000e+00> : vector<8x64xf32>
    %115 = tpu.matmul %112, %114, %cst_65 {dimension_numbers = #tpu.dot_dimension_numbers<[1], [0], [0], [1], [0, 0, 1, 1], [], []>} : vector<8x32xbf16>, vector<32x64xbf16>, vector<8x64xf32> -> vector<8x64xf32>
    %c2_66 = arith.constant 2 : index
    %c0_67 = arith.constant 0 : index
    %c0_68 = arith.constant 0 : index
    %116 = vector.load %arg4[%c2_66, %c0_67, %c0_68] : memref<4x1x64xf32, #tpu.memory_space<vmem>>, vector<1x1x64xf32>
    %117 = vector.shape_cast %116 : vector<1x1x64xf32> to vector<1x64xf32>
    %118 = vector.broadcast %117 : vector<1x64xf32> to vector<8x64xf32>
    %119 = arith.addf %115, %118 : vector<8x64xf32>
    %120 = vector.extract_strided_slice %119 {offsets = [0, 0], sizes = [8, 32], strides = [1, 1]} : vector<8x64xf32> to vector<8x32xf32>
    %121 = vector.extract_strided_slice %119 {offsets = [0, 32], sizes = [8, 32], strides = [1, 1]} : vector<8x64xf32> to vector<8x32xf32>
    %122 = math.tanh %120 : vector<8x32xf32>
    %123 = arith.negf %121 : vector<8x32xf32>
    %124 = math.exp %123 : vector<8x32xf32>
    %cst_69 = arith.constant 1.000000e+00 : f32
    %125 = vector.broadcast %cst_69 : f32 to vector<8x32xf32>
    %126 = arith.addf %125, %124 : vector<8x32xf32>
    %127 = arith.divf %125, %126 : vector<8x32xf32>
    %128 = arith.mulf %122, %127 : vector<8x32xf32>
    %129 = arith.addf %111, %128 : vector<8x32xf32>
    %cst_70 = arith.constant dense<0.000000e+00> : vector<8xf32>
    %130 = vector.multi_reduction <add>, %129, %cst_70 [1] : vector<8x32xf32> to vector<8xf32>
    %131 = vector.shape_cast %130 : vector<8xf32> to vector<8x1xf32>
    %cst_71 = arith.constant 3.200000e+01 : f32
    %132 = vector.broadcast %cst_71 : f32 to vector<8x1xf32>
    %133 = arith.divf %131, %132 : vector<8x1xf32>
    %134 = vector.broadcast %133 : vector<8x1xf32> to vector<8x32xf32>
    %135 = arith.subf %129, %134 : vector<8x32xf32>
    %136 = arith.mulf %135, %135 : vector<8x32xf32>
    %cst_72 = arith.constant dense<0.000000e+00> : vector<8xf32>
    %137 = vector.multi_reduction <add>, %136, %cst_72 [1] : vector<8x32xf32> to vector<8xf32>
    %138 = vector.shape_cast %137 : vector<8xf32> to vector<8x1xf32>
    %cst_73 = arith.constant 3.200000e+01 : f32
    %139 = vector.broadcast %cst_73 : f32 to vector<8x1xf32>
    %140 = arith.divf %138, %139 : vector<8x1xf32>
    %c2_74 = arith.constant 2 : index
    %c0_75 = arith.constant 0 : index
    %c0_76 = arith.constant 0 : index
    %141 = vector.load %arg5[%c2_74, %c0_75, %c0_76] : memref<4x1x32xf32, #tpu.memory_space<vmem>>, vector<1x1x32xf32>
    %142 = vector.shape_cast %141 : vector<1x1x32xf32> to vector<1x32xf32>
    %cst_77 = arith.constant 9.99999996E-13 : f32
    %143 = vector.broadcast %cst_77 : f32 to vector<8x1xf32>
    %144 = arith.addf %140, %143 : vector<8x1xf32>
    %145 = math.rsqrt %144 : vector<8x1xf32>
    %146 = vector.broadcast %145 : vector<8x1xf32> to vector<8x32xf32>
    %147 = arith.mulf %135, %146 : vector<8x32xf32>
    %148 = vector.broadcast %142 : vector<1x32xf32> to vector<8x32xf32>
    %149 = arith.mulf %148, %147 : vector<8x32xf32>
    %c2_78 = arith.constant 2 : index
    %c0_79 = arith.constant 0 : index
    %c0_80 = arith.constant 0 : index
    %150 = vector.load %arg6[%c2_78, %c0_79, %c0_80] : memref<4x1x32xf32, #tpu.memory_space<vmem>>, vector<1x1x32xf32>
    %151 = vector.shape_cast %150 : vector<1x1x32xf32> to vector<1x32xf32>
    %152 = vector.broadcast %151 : vector<1x32xf32> to vector<8x32xf32>
    %153 = arith.addf %149, %152 : vector<8x32xf32>
    %154 = arith.truncf %153 : vector<8x32xf32> to vector<8x32xbf16>
    %c3 = arith.constant 3 : index
    %c1_81 = arith.constant 1 : index
    %c0_82 = arith.constant 0 : index
    %c0_83 = arith.constant 0 : index
    %155 = vector.load %arg3[%c3, %c1_81, %c0_82, %c0_83] : memref<4x3x32x64xbf16, #tpu.memory_space<vmem>>, vector<1x1x32x64xbf16>
    %156 = vector.shape_cast %155 : vector<1x1x32x64xbf16> to vector<32x64xbf16>
    %cst_84 = arith.constant dense<0.000000e+00> : vector<8x64xf32>
    %157 = tpu.matmul %154, %156, %cst_84 {dimension_numbers = #tpu.dot_dimension_numbers<[1], [0], [0], [1], [0, 0, 1, 1], [], []>} : vector<8x32xbf16>, vector<32x64xbf16>, vector<8x64xf32> -> vector<8x64xf32>
    %c3_85 = arith.constant 3 : index
    %c0_86 = arith.constant 0 : index
    %c0_87 = arith.constant 0 : index
    %158 = vector.load %arg4[%c3_85, %c0_86, %c0_87] : memref<4x1x64xf32, #tpu.memory_space<vmem>>, vector<1x1x64xf32>
    %159 = vector.shape_cast %158 : vector<1x1x64xf32> to vector<1x64xf32>
    %160 = vector.broadcast %159 : vector<1x64xf32> to vector<8x64xf32>
    %161 = arith.addf %157, %160 : vector<8x64xf32>
    %162 = vector.extract_strided_slice %161 {offsets = [0, 0], sizes = [8, 32], strides = [1, 1]} : vector<8x64xf32> to vector<8x32xf32>
    %163 = vector.extract_strided_slice %161 {offsets = [0, 32], sizes = [8, 32], strides = [1, 1]} : vector<8x64xf32> to vector<8x32xf32>
    %164 = math.tanh %162 : vector<8x32xf32>
    %165 = arith.negf %163 : vector<8x32xf32>
    %166 = math.exp %165 : vector<8x32xf32>
    %cst_88 = arith.constant 1.000000e+00 : f32
    %167 = vector.broadcast %cst_88 : f32 to vector<8x32xf32>
    %168 = arith.addf %167, %166 : vector<8x32xf32>
    %169 = arith.divf %167, %168 : vector<8x32xf32>
    %170 = arith.mulf %164, %169 : vector<8x32xf32>
    %171 = arith.addf %153, %170 : vector<8x32xf32>
    %cst_89 = arith.constant dense<0.000000e+00> : vector<8xf32>
    %172 = vector.multi_reduction <add>, %171, %cst_89 [1] : vector<8x32xf32> to vector<8xf32>
    %173 = vector.shape_cast %172 : vector<8xf32> to vector<8x1xf32>
    %cst_90 = arith.constant 3.200000e+01 : f32
    %174 = vector.broadcast %cst_90 : f32 to vector<8x1xf32>
    %175 = arith.divf %173, %174 : vector<8x1xf32>
    %176 = vector.broadcast %175 : vector<8x1xf32> to vector<8x32xf32>
    %177 = arith.subf %171, %176 : vector<8x32xf32>
    %178 = arith.mulf %177, %177 : vector<8x32xf32>
    %cst_91 = arith.constant dense<0.000000e+00> : vector<8xf32>
    %179 = vector.multi_reduction <add>, %178, %cst_91 [1] : vector<8x32xf32> to vector<8xf32>
    %180 = vector.shape_cast %179 : vector<8xf32> to vector<8x1xf32>
    %cst_92 = arith.constant 3.200000e+01 : f32
    %181 = vector.broadcast %cst_92 : f32 to vector<8x1xf32>
    %182 = arith.divf %180, %181 : vector<8x1xf32>
    %c3_93 = arith.constant 3 : index
    %c0_94 = arith.constant 0 : index
    %c0_95 = arith.constant 0 : index
    %183 = vector.load %arg5[%c3_93, %c0_94, %c0_95] : memref<4x1x32xf32, #tpu.memory_space<vmem>>, vector<1x1x32xf32>
    %184 = vector.shape_cast %183 : vector<1x1x32xf32> to vector<1x32xf32>
    %cst_96 = arith.constant 9.99999996E-13 : f32
    %185 = vector.broadcast %cst_96 : f32 to vector<8x1xf32>
    %186 = arith.addf %182, %185 : vector<8x1xf32>
    %187 = math.rsqrt %186 : vector<8x1xf32>
    %188 = vector.broadcast %187 : vector<8x1xf32> to vector<8x32xf32>
    %189 = arith.mulf %177, %188 : vector<8x32xf32>
    %190 = vector.broadcast %184 : vector<1x32xf32> to vector<8x32xf32>
    %191 = arith.mulf %190, %189 : vector<8x32xf32>
    %c3_97 = arith.constant 3 : index
    %c0_98 = arith.constant 0 : index
    %c0_99 = arith.constant 0 : index
    %192 = vector.load %arg6[%c3_97, %c0_98, %c0_99] : memref<4x1x32xf32, #tpu.memory_space<vmem>>, vector<1x1x32xf32>
    %193 = vector.shape_cast %192 : vector<1x1x32xf32> to vector<1x32xf32>
    %194 = vector.broadcast %193 : vector<1x32xf32> to vector<8x32xf32>
    %195 = arith.addf %191, %194 : vector<8x32xf32>
    %196 = arith.truncf %195 : vector<8x32xf32> to vector<8x32xbf16>
    %c0_100 = arith.constant 0 : index
    %c0_101 = arith.constant 0 : index
    %197 = vector.load %arg7[%c0_100, %c0_101] : memref<32x96xbf16, #tpu.memory_space<vmem>>, vector<32x96xbf16>
    %cst_102 = arith.constant dense<0.000000e+00> : vector<8x96xf32>
    %198 = tpu.matmul %196, %197, %cst_102 {dimension_numbers = #tpu.dot_dimension_numbers<[1], [0], [0], [1], [0, 0, 1, 1], [], []>} : vector<8x32xbf16>, vector<32x96xbf16>, vector<8x96xf32> -> vector<8x96xf32>
    %c0_103 = arith.constant 0 : index
    %c0_104 = arith.constant 0 : index
    %199 = vector.load %arg8[%c0_103, %c0_104] : memref<1x96xf32, #tpu.memory_space<vmem>>, vector<1x96xf32>
    %200 = vector.broadcast %199 : vector<1x96xf32> to vector<8x96xf32>
    %201 = arith.addf %198, %200 : vector<8x96xf32>
    %202 = vector.extract_strided_slice %201 {offsets = [0, 0], sizes = [8, 32], strides = [1, 1]} : vector<8x96xf32> to vector<8x32xf32>
    %cst_105 = arith.constant 0.176776692 : f32
    %203 = vector.broadcast %cst_105 : f32 to vector<8x32xf32>
    %204 = arith.mulf %202, %203 : vector<8x32xf32>
    %205 = arith.truncf %204 : vector<8x32xf32> to vector<8x32xbf16>
    %206 = vector.extract_strided_slice %201 {offsets = [0, 32], sizes = [8, 32], strides = [1, 1]} : vector<8x96xf32> to vector<8x32xf32>
    %207 = arith.truncf %206 : vector<8x32xf32> to vector<8x32xbf16>
    %208 = vector.extract_strided_slice %201 {offsets = [0, 64], sizes = [8, 32], strides = [1, 1]} : vector<8x96xf32> to vector<8x32xf32>
    %209 = arith.truncf %208 : vector<8x32xf32> to vector<8x32xbf16>
    %cst_106 = arith.constant dense<0.000000e+00> : vector<8x8xf32>
    %210 = tpu.matmul %205, %207, %cst_106 {dimension_numbers = #tpu.dot_dimension_numbers<[1], [1], [0], [0], [0, 0, 1, 0], [], []>} : vector<8x32xbf16>, vector<8x32xbf16>, vector<8x8xf32> -> vector<8x8xf32>
    %c0_107 = arith.constant 0 : index
    %c0_108 = arith.constant 0 : index
    %c0_109 = arith.constant 0 : index
    %211 = vector.load %arg2[%c0_107, %c0_108, %c0_109] : memref<1x1x8xf32, #tpu.memory_space<vmem>>, vector<1x1x8xf32>
    %212 = vector.shape_cast %211 : vector<1x1x8xf32> to vector<1x8xf32>
    %cst_110 = arith.constant 1.000000e+00 : f32
    %213 = vector.broadcast %cst_110 : f32 to vector<1x8xf32>
    %214 = arith.subf %213, %212 : vector<1x8xf32>
    %cst_111 = arith.constant -176776.688 : f32
    %215 = vector.broadcast %cst_111 : f32 to vector<1x8xf32>
    %216 = arith.mulf %214, %215 : vector<1x8xf32>
    %217 = vector.broadcast %216 : vector<1x8xf32> to vector<8x8xf32>
    %218 = arith.addf %210, %217 : vector<8x8xf32>
    %cst_112 = arith.constant dense<0xFF800000> : vector<8xf32>
    %219 = vector.multi_reduction <maximumf>, %218, %cst_112 [0] : vector<8x8xf32> to vector<8xf32>
    %220 = vector.shape_cast %219 : vector<8xf32> to vector<1x8xf32>
    %221 = vector.broadcast %220 : vector<1x8xf32> to vector<8x8xf32>
    %222 = arith.subf %218, %221 : vector<8x8xf32>
    %223 = math.exp %222 : vector<8x8xf32>
    %cst_113 = arith.constant dense<0.000000e+00> : vector<8xf32>
    %224 = vector.multi_reduction <add>, %223, %cst_113 [0] : vector<8x8xf32> to vector<8xf32>
    %225 = vector.shape_cast %224 : vector<8xf32> to vector<1x8xf32>
    %226 = tpu.reciprocal %225 {approx = true} : vector<1x8xf32> -> vector<1x8xf32>
    %227 = vector.broadcast %226 : vector<1x8xf32> to vector<8x8xf32>
    %228 = arith.mulf %223, %227 : vector<8x8xf32>
    %229 = arith.truncf %228 : vector<8x8xf32> to vector<8x8xbf16>
    %cst_114 = arith.constant dense<0.000000e+00> : vector<8x32xf32>
    %230 = tpu.matmul %229, %209, %cst_114 {dimension_numbers = #tpu.dot_dimension_numbers<[1], [0], [0], [1], [0, 0, 1, 1], [], []>} : vector<8x8xbf16>, vector<8x32xbf16>, vector<8x32xf32> -> vector<8x32xf32>
    %231 = tpu.concatenate %195, %230 in 1 : vector<8x32xf32>, vector<8x32xf32> -> vector<8x64xf32>
    %c0_115 = arith.constant 0 : index
    %c0_116 = arith.constant 0 : index
    %c0_117 = arith.constant 0 : index
    %232 = vector.load %arg9[%c0_115, %c0_116, %c0_117] : memref<1x8x64xf32, #tpu.memory_space<vmem>>, vector<1x8x64xf32>
    %233 = vector.shape_cast %232 : vector<1x8x64xf32> to vector<8x64xf32>
    %234 = vector.shape_cast %231 : vector<8x64xf32> to vector<1x8x64xf32>
    tpu.vector_store %arg9[%c0_115, %c0_116, %c0_117], %234 {strides = array<i32>} : memref<1x8x64xf32, #tpu.memory_space<vmem>>, vector<1x8x64xf32>,
    return
  }
  func.func @transform_0(%arg0: i32) -> (i32, i32, i32) {
    %c0_i32 = arith.constant 0 : i32
    %c0_i32_0 = arith.constant 0 : i32
    %c0_i32_1 = arith.constant 0 : i32
    return %arg0, %c0_i32, %c0_i32_0 : i32, i32, i32
  }
  func.func @transform_1(%arg0: i32) -> (i32, i32, i32) {
    %c0_i32 = arith.constant 0 : i32
    %c0_i32_0 = arith.constant 0 : i32
    %c0_i32_1 = arith.constant 0 : i32
    return %arg0, %c0_i32, %c0_i32_0 : i32, i32, i32
  }
  func.func @transform_2(%arg0: i32) -> (i32, i32, i32, i32) {
    %c0_i32 = arith.constant 0 : i32
    %c0_i32_0 = arith.constant 0 : i32
    %c0_i32_1 = arith.constant 0 : i32
    %c0_i32_2 = arith.constant 0 : i32
    %c0_i32_3 = arith.constant 0 : i32
    return %c0_i32, %c0_i32_0, %c0_i32_1, %c0_i32_2 : i32, i32, i32, i32
  }
  func.func @transform_3(%arg0: i32) -> (i32, i32, i32) {
    %c0_i32 = arith.constant 0 : i32
    %c0_i32_0 = arith.constant 0 : i32
    %c0_i32_1 = arith.constant 0 : i32
    %c0_i32_2 = arith.constant 0 : i32
    return %c0_i32, %c0_i32_0, %c0_i32_1 : i32, i32, i32
  }
  func.func @transform_4(%arg0: i32) -> (i32, i32, i32) {
    %c0_i32 = arith.constant 0 : i32
    %c0_i32_0 = arith.constant 0 : i32
    %c0_i32_1 = arith.constant 0 : i32
    %c0_i32_2 = arith.constant 0 : i32
    return %c0_i32, %c0_i32_0, %c0_i32_1 : i32, i32, i32
  }
  func.func @transform_5(%arg0: i32) -> (i32, i32, i32) {
    %c0_i32 = arith.constant 0 : i32
    %c0_i32_0 = arith.constant 0 : i32
    %c0_i32_1 = arith.constant 0 : i32
    %c0_i32_2 = arith.constant 0 : i32
    return %c0_i32, %c0_i32_0, %c0_i32_1 : i32, i32, i32
  }
  func.func @transform_6(%arg0: i32) -> (i32, i32) {
    %c0_i32 = arith.constant 0 : i32
    %c0_i32_0 = arith.constant 0 : i32
    %c0_i32_1 = arith.constant 0 : i32
    return %c0_i32, %c0_i32_0 : i32, i32
  }
  func.func @transform_7(%arg0: i32) -> (i32, i32) {
    %c0_i32 = arith.constant 0 : i32
    %c0_i32_0 = arith.constant 0 : i32
    %c0_i32_1 = arith.constant 0 : i32
    return %c0_i32, %c0_i32_0 : i32, i32
  }
  func.func @transform_8(%arg0: i32) -> (i32, i32, i32) {
    %c0_i32 = arith.constant 0 : i32
    %c0_i32_0 = arith.constant 0 : i32
    %c0_i32_1 = arith.constant 0 : i32
    return %arg0, %c0_i32, %c0_i32_0 : i32, i32, i32
  }
}

</mosaic_0001>

<bundles_post_ra>
// kernel: tpu_custom_call.1
= control target key start
LH: loop header
LB: loop body
LE: loop exit
PB: predicated region body
PF: predicated region fallthrough
CT: control target
= control target key end

     0   :  { %s2388_s0 = inlined_call_operand.hbm [shape: f32[2,8,32], index: 0, kind: input, shape index: {}]   ;;  %s2389_s1 = inlined_call_operand.hbm [shape: f32[2,1,8], index: 1, kind: input, shape index: {}]   ;;  %s2390_s2 = inlined_call_operand.hbm [shape: bf16[4,3,32,64], index: 2, kind: input, shape index: {}]   ;;  %s2391_s3 = inlined_call_operand.vmem [shape: f32[4,1,64], index: 3, kind: input, shape index: {}]   ;;  %s2392_s4 = inlined_call_operand.hbm [shape: f32[4,1,32], index: 4, kind: input, shape index: {}]   ;;  %s2393_s5 = inlined_call_operand.vmem [shape: f32[4,1,32], index: 5, kind: input, shape index: {}]   ;;  %s2394_s6 = inlined_call_operand.hbm [shape: bf16[32,96], index: 6, kind: input, shape index: {}]   ;;  %s2395_s7 = inlined_call_operand.vmem [shape: f32[1,96], index: 7, kind: input, shape index: {}]   ;;  %s2396_s8 = inlined_call_operand.hbm [shape: f32[2,8,64], index: 8, kind: output, shape index: {}]  }
   0x1   :  { %2401 = sst [smem:[#allocation17_spill]] %s2390_s2 }
   0x2   :  { %2402 = sst [smem:[#allocation18_spill]] %s2392_s4 }
   0x3   :  { %2403 = sst [smem:[#allocation19_spill]] %s2394_s6 }
   0x4   :  { %13 = vsyncpa [#allocation3], 0 }
   0x5   :  { %15 = vsyncpa [#allocation3 + $0x1], 0 }
   0x6   :  { %16 = vsyncpa [#allocation6], 0 }
   0x7   :  { %18 = vsyncpa [#allocation6 + $0x1], 0 }
   0x8   :  { %19 = vsyncpa [#allocation9], 0 }
   0x9   :  { %20 = vsyncpa [#allocation4], 0 }
   0xa   :  { %22 = vsyncpa [#allocation4 + $0x1], 0  ;;  %s2044_s27 = smov 0   ;;  %s2046_s28 = smov 0  }
   0xb   :  { %s2048_s29 = smov 0   ;;  %s2050_s30 = smov 0  }
   0xc LB: > { %s2065_s9 = sadd.s32 4294967295, %s1982_s30   ;;  %s1441_s10 = sadd.s32 4294967294, %s1982_s30   ;;  %s1982_s30 = sphi %s2050_s30, %s2426_s30   ;;  %s1978_s29 = sphi %s2048_s29, %s2425_s29   ;;  %s1974_s28 = sphi %s2046_s28, %s2424_s28   ;;  %s1970_s27 = sphi %s2044_s27, %s2423_s27  }
   0xd   : > { %p48_p0 = scmp.ne.s32.totalorder %s1974_s28, %s1970_s27  ;;  %p2397_p1 = scmp.eq.s32.totalorder %s2065_s9, 0 }
   0xe   : > { %p224_p2 = scmp.eq.s32.totalorder %s2065_s9, 1  ;;  %p230_p3 = scmp.eq.s32.totalorder %s1441_s10, 1 }
   0xf   : > { %p2074_p4 = por %p2397_p1, %p48_p0  ;;  %p1442_p5 = scmp.ge.s32.totalorder %s1982_s30, 1 }
  0x10   : > { %p2079_p6 = por %p230_p3, %p48_p0  ;;  %p237_p7 = scmp.lt.s32.totalorder %s1982_s30, 3 }
  0x11   : > { %s2404_s11 = scalar_select %p2074_p4, 1, 0 }
  0x12   : > { %s2405_s12 = scalar_select %p2079_p6, 1, 0 }
  0x13   : > { %p2084_p8 = pnand %p1442_p5, %p237_p7  ;;  %s1984_s14 = smov [#allocation7]  }
  0x14   : > { %s249_s15 = sshll.u32 %s1984_s14, 4  ;;  %s1985_s17 = smov [#allocation8]   ;;  %s250_s15 = int_to_ptr.vmem [resolvable:$true] %s249_s15 }
  0x15   : > { %s2406_s13 = scalar_select %p2084_p8, 1, 0 }
  0x16   : > { %p1645_p9 = pneg %p2084_p8  ;;  %s265_s18 = sshll.u32 %s1985_s17, 4  ;;  %s266_s18 = int_to_ptr.vmem [resolvable:$true] %s265_s18 }
  0x17   : > { %s1783_s19 = scalar_lea.vmem %s250_s15, 3072  ;;  %p1791_p5 = scmp.lt.s32.totalorder %s250_s15, %s250_s15 }
  0x18   : > { %p2093_p11 = pnand %p1645_p9, %p2397_p1  ;;  %p1784_p13 = scmp.ne.s32.totalorder %s250_s15, %s1783_s19 }
  0x19   : > { %p1792_p7 = scmp.lt.s32.totalorder %s1783_s19, %s1783_s19 }
  0x1a   : > { %p1774_p12 = pneg %p2093_p11 }
  0x1b   : > { %p1793_p10 = por %p1792_p7, %p1791_p5 }
  0x1c   : > { %p1786_p0 = pnand %p1784_p13, %p1774_p12 }
  0x1e   : > { %p1787_p3 = pneg %p1786_p0 }
  0x20   : > { %p1794_p9 = pnand %p1793_p10, %p1787_p3 }
  0x22   : > { %1797 = shalt.err (!%p1794_p9)
}
  0x23   : > { %s1986_s20 = smov 64   ;;  %s1987_s21 = smov 4  }
  0x24   : > { %s2408_s2 = sld [smem:[#allocation17_spill]]  ;;  %s1809_s24 = scalar_lea.vmem %s266_s18, 64 }
  0x25   : > { %p1810_p13 = scmp.ne.s32.totalorder %s266_s18, %s1809_s24  ;;  %p1817_p10 = scmp.lt.s32.totalorder %s266_s18, %s266_s18 }
  0x26   : > { %p1818_p3 = scmp.lt.s32.totalorder %s1809_s24, %s1809_s24 }
  0x27   : > { %p1812_p0 = pnand %p1810_p13, %p1774_p12 }
  0x28   : > { %p1819_p7 = por %p1818_p3, %p1817_p10 }
  0x29   : > { %p1813_p5 = pneg %p1812_p0 }
  0x2a   : > { %1648 = dma.hbm_to_vmem [thread:$0]  (!%p2093_p11), %s2408_s2, 3072, %s250_s15, [#allocation6], %s1986_s20, %s1986_s20, %s1987_s21  }
  0x2b   : > { %p1820_p9 = pnand %p1819_p7, %p1813_p5 }
  0x2d   : > { %1823 = shalt.err (!%p1820_p9)
}
  0x2e   : > { %s1988_s25 = smov 16   ;;  %s1989_s26 = smov 1  }
  0x2f   : > { %s2409_s4 = sld [smem:[#allocation18_spill]]  ;;  %s1990_s15 = smov [#allocation10]  }
  0x30   : > { %s281_s17 = sshll.u32 %s1990_s15, 4  ;;  %s2119_s19 = sadd.s32 1, %s1982_s30   ;;  %s282_s17 = int_to_ptr.vmem [resolvable:$true] %s281_s17 }
  0x31   : > { %s1835_s22 = scalar_lea.vmem %s282_s17, 256  ;;  %p1843_p10 = scmp.lt.s32.totalorder %s282_s17, %s282_s17 }
  0x32   : > { %p1836_p13 = scmp.ne.s32.totalorder %s282_s17, %s1835_s22  ;;  %p1844_p3 = scmp.lt.s32.totalorder %s1835_s22, %s1835_s22 }
  0x34   : > { %p1838_p0 = pnand %p1836_p13, %p1774_p12  ;;  %p1845_p7 = por %p1844_p3, %p1843_p10 }
  0x35   : > { %1651 = dma.hbm_to_vmem [thread:$0]  (!%p2093_p11), %s2409_s4, 64, %s266_s18, [#allocation9], %s1988_s25, %s1988_s25, %s1989_s26  }
  0x36   : > { %p1839_p5 = pneg %p1838_p0 }
  0x38   : > { %p1846_p9 = pnand %p1845_p7, %p1839_p5 }
  0x3a   : > { %1849 = shalt.err (!%p1846_p9)
}
  0x3b   : > { %s2410_s6 = sld [smem:[#allocation19_spill]]  ;;  %s32_s24 = ssub.s32 %s1982_s30, %s2119_s19 }
  0x3c   : > { %s35_s16 = sadd.s32 1, %s1978_s29  ;;  %p33_p12 = scmp.eq.s32.totalorder %s32_s24, 0 }
  0x3d   : > { %p42_p13 = scmp.ne.s32.totalorder %s1978_s29, %s1974_s28  ;;  %p43_p0 = scmp.eq.s32.totalorder %s1982_s30, 0 }
  0x3e   : > { %p1669_p5 = scmp.lt.s32.totalorder %s1982_s30, 2  ;;  %s2149_s10 = sand.u32 1, %s1978_s29  }
  0x3f   : > { %s2140_s25 = scalar_select %p33_p12, %s1978_s29, %s35_s16  }
  0x40   : > { %p44_p10 = por %p43_p0, %p42_p13  ;;  %p2144_p3 = por %p224_p2, %p42_p13 }
  0x41   : > { %1654 = dma.hbm_to_vmem [thread:$0]  (!%p2093_p11), %s2410_s6, 256, %s282_s17, [#allocation9], %s1986_s20, %s1986_s20, %s1987_s21  }
  0x42   : > { %s2411_s26 = scalar_select %p2144_p3, 1, 0 }
  0x43   : > { %s1448_s20 = sshll.u32 %s1982_s30, 7  ;;  %s1447_s21 = sshll.u32 %s2149_s10, 3 }
  0x44   : > { %s2156_s17 = scalar_lea.hbm %s2388_s0, %s1448_s20  ;;  %s302_s22 = scalar_lea.vmem [#allocation2], %s1447_s21 }
  0x45   : > { %s309_s18 = sshll.u32 %s302_s22, 4  ;;  %p2158_p2 = pnand %p1669_p5, %p44_p10  ;;  %s310_s18 = int_to_ptr.vmem [resolvable:$true] %s309_s18 }
  0x46   : > { %s299_s16 = scalar_lea.sflag [#allocation3], %s2149_s10  ;;  %s1850_s2 = scalar_lea.hbm %s2156_s17, 128 }
  0x47   : > { %p1851_p11 = scmp.ne.s32.totalorder %s2156_s17, %s1850_s2  ;;  %p1852_p7 = pneg %p2158_p2 }
  0x48   : > { %s1855_s14 = scalar_lea.hbm %s2388_s0, 256  ;;  %p1856_p13 = scmp.lt.s32.totalorder %s2156_s17, %s2388_s0 }
  0x49   : > { %p1853_p9 = pnand %p1852_p7, %p1851_p11  ;;  %p1857_p0 = scmp.lt.s32.totalorder %s1855_s14, %s1850_s2 }
  0x4b   : > { %p1854_p12 = pneg %p1853_p9  ;;  %p1858_p5 = por %p1857_p0, %p1856_p13 }
  0x4d   : > { %p1859_p10 = pnand %p1858_p5, %p1854_p12 }
  0x4f   : > { %1862 = shalt.err (!%p1859_p10)
}
  0x50   : > { %s1863_s24 = scalar_lea.vmem %s310_s18, 128  ;;  %s1991_s4 = smov [#allocation2]  }
  0x51   : > { %p1864_p1 = scmp.ne.s32.totalorder %s310_s18, %s1863_s24  ;;  %s1868_s6 = sshll.u32 %s1991_s4, 4  ;;  %s1869_s6 = int_to_ptr.vmem [resolvable:$false] %s1868_s6 }
  0x52   : > { %s1870_s20 = scalar_lea.vmem %s1869_s6, 256  ;;  %p1871_p9 = scmp.lt.s32.totalorder %s310_s18, %s1869_s6 }
  0x53   : > { %p1866_p6 = pnand %p1864_p1, %p1852_p7  ;;  %p1872_p3 = scmp.lt.s32.totalorder %s1870_s20, %s1863_s24 }
  0x55   : > { %p1867_p11 = pneg %p1866_p6  ;;  %p1873_p4 = por %p1872_p3, %p1871_p9 }
  0x57   : > { %p1874_p8 = pnand %p1873_p4, %p1867_p11 }
  0x59   : > { %1877 = shalt.err (!%p1874_p8)
}
  0x5a   : > { %1658 = dma.hbm_to_vmem [thread:$0]  (!%p2158_p2), %s2156_s17, 128, %s310_s18, %s299_s16  }
  0x5b   : > { %s1449_s2 = sshll.u32 %s1982_s30, 4  ;;  %s319_s6 = scalar_lea.vmem [#allocation5], %s2149_s10 }
  0x5c   : > { %s2188_s4 = scalar_lea.hbm %s2389_s1, %s1449_s2  ;;  %s326_s24 = sshll.u32 %s319_s6, 4  ;;  %s327_s24 = int_to_ptr.vmem [resolvable:$true] %s326_s24 }
  0x5d   : > { %s2413_s15 = sand.u32 1, %s1982_s30   ;;  %s1878_s20 = scalar_lea.hbm %s2188_s4, 16 }
  0x5e   : > { %s317_s22 = scalar_lea.sflag [#allocation6], %s2413_s15  ;;  %p1879_p1 = scmp.ne.s32.totalorder %s2188_s4, %s1878_s20 }
  0x5f   : > { %s1883_s16 = scalar_lea.hbm %s2389_s1, 32  ;;  %p1884_p8 = scmp.lt.s32.totalorder %s2188_s4, %s2389_s1 }
  0x60   : > { %p1881_p4 = pnand %p1879_p1, %p1852_p7  ;;  %p1885_p3 = scmp.lt.s32.totalorder %s1883_s16, %s1878_s20 }
  0x62   : > { %p1882_p6 = pneg %p1881_p4  ;;  %p1886_p12 = por %p1885_p3, %p1884_p8 }
  0x64   : > { %p1887_p13 = pnand %p1886_p12, %p1882_p6 }
  0x66   : > { %1890 = shalt.err (!%p1887_p13)
}
  0x67   : > { %s1891_s10 = scalar_lea.vmem %s327_s24, 16  ;;  %s1992_s14 = smov [#allocation5]  }
  0x68   : > { %p1892_p0 = scmp.ne.s32.totalorder %s327_s24, %s1891_s10  ;;  %s1896_s6 = sshll.u32 %s1992_s14, 4  ;;  %s1897_s6 = int_to_ptr.vmem [resolvable:$false] %s1896_s6 }
  0x69   : > { %s1898_s15 = scalar_lea.vmem %s1897_s6, 32  ;;  %p1899_p11 = scmp.lt.s32.totalorder %s327_s24, %s1897_s6 }
  0x6a   : > { %p1894_p5 = pnand %p1892_p0, %p1852_p7  ;;  %p1900_p9 = scmp.lt.s32.totalorder %s1898_s15, %s1891_s10 }
  0x6c   : > { %p1895_p10 = pneg %p1894_p5  ;;  %p1901_p1 = por %p1900_p9, %p1899_p11 }
  0x6e   : > { %p1902_p4 = pnand %p1901_p1, %p1895_p10 }
  0x70   : > { %1905 = shalt.err (!%p1902_p4)
}
  0x71   : > { %1661 = dma.hbm_to_vmem [thread:$0]  (!%p2158_p2), %s2188_s4, 16, %s327_s24, %s317_s22  }
  0x72   : > { %p2414_p6 = scmp.ne.s32.totalorder %s2406_s13, 0 }
  0x73   : > { %s2214_s20 = sand.u32 (!%p2414_p6), 1, %s1974_s28   ;;  %p2415_p7 = scmp.ne.s32.totalorder (!%p2414_p6), %s2404_s11, 0 }
  0x74   : > { %335 = sbr.rel (%p2414_p6) target bundleno = 3690 (0xe6a), region = 52  ;;  %s1451_s17 = sshll.u32 (!%p2414_p6), %s2214_s20, 3 }
  0x75   : > { %s338_s18 = scalar_lea.sflag (!%p2414_p6), [#allocation3], %s2214_s20  ;;  %s341_s16 = scalar_lea.vmem (!%p2414_p6), [#allocation2], %s1451_s17 }
  0x79   : > { %1949 = dma.done.wait (%p2415_p7), %s338_s18, 128  }
  0x7a   : > { %1951 = vsyncadd (%p2415_p7), %s338_s18, 4294967168  ;;  %s346_s13 = sand.u32 1, %s2065_s9   ;;  %s349_s4 = scalar_lea.vmem [#allocation5], %s2214_s20 }
  0x7b   : > { %s347_s23 = scalar_lea.sflag [#allocation6], %s346_s13 }
  0x7c   : > { %1953 = dma.done.wait (%p2415_p7), %s347_s23, 16  }
  0x7d   : > { %1955 = vsyncadd (%p2415_p7), %s347_s23, 4294967280  ;;  %p2416_p2 = scmp.eq.s32.totalorder %s2065_s9, 0 }
  0x7f   : > { %1957 = dma.done.wait (%p2416_p2), [#allocation6], 3072   ;;  %p2417_p8 = pmov %p2416_p2 }
  0x80   : > { %p2418_p3 = pmov %p2416_p2 }
  0x81   : > { %1959 = vsyncadd (%p2417_p8), [#allocation6], 4294964224 }
  0x82   : > { %1961 = dma.done.wait (%p2418_p3), [#allocation9], 320   ;;  %p2419_p12 = pmov %p2416_p2 }
  0x83   : > { %v1993_v0 = vmov 0.0   ;;  %vm1994_vm0 = vmmov 0   ;;  %v1718_v1 = vld [vmem:[#allocation7 + $0x28] sm:$0xff]   ;;  %v1720_v3 = vld [vmem:[#allocation7 + $0x20] sm:$0xff]   ;;  %vm425_vm1 = vcmask 261120   ;;  %v1722_v7 = vld [vmem:[#allocation7 + $0x18] sm:$0xff]  }
  0x84   : > { %1963 = vsyncadd (%p2419_p12), [#allocation9], 4294966976  ;;  %1543 = vmatprep.subr.bf16.mxu0 %v1993_v0  ;;  %1551 = vmatprep.subr.bf16.mxu1 %v1993_v0  ;;  %v1719_v2 = vld [vmem:[#allocation7 + $0x8] sm:$0xff]   ;;  %v1721_v4 = vld [vmem:[#allocation7] sm:$0xff]   ;;  %vm528_vm2 = vcmask 1045504   ;;  %vm585_vm3 = vcmask 1041408  }
  0x85   : > { %1547 = vmatprep.mubr.msk.bf16.mxu0 %vm1994_vm0, %v1993_v0  ;;  %1555 = vmatprep.mubr.msk.bf16.mxu1 %vm1994_vm0, %v1993_v0  ;;  %v399_v5 = vld [vmem:[%s341_s16] sm:$0xff]  ;;  %s1995_s22 = smov 96   ;;  %v1467_v51 = vld [vmem:[#allocation8] ss:$0 sm:$0xff]  ;;  %vm767_vm4 = vcmask 1043456   ;;  %s1996_s6 = smov 64  }
  0x86   : > { %1544 = vmatpush3.bf16.msra.mxu0 %v1718_v1  ;;  %1552 = vmatpush3.bf16.msra.mxu1 %v1719_v2  ;;  %v400_v6 = vpack.c.bf16 %v399_v5, %v399_v5  ;;  %v1723_v9 = vld [vmem:[#allocation7 + $0x10] sm:$0xff]   ;;  %v1465_v23 = vld [vmem:[%s2391_s3] ss:$0 sm:$0xff]  ;;  %v1724_v43 = vld [vmem:[#allocation7 + $0x38] sm:$0xff]   ;;  %vm1233_vm5 = vcmask 64512   ;;  %s397_s15 = scalar_lea.vmem [#allocation11], %s1451_s17 }
  0x87   : > { %1545 = vmatprep.subr.bf16.mxu0 %v1993_v0  ;;  %1553 = vmatprep.subr.bf16.mxu1 %v1993_v0  ;;  %v1725_v44 = vld [vmem:[#allocation7 + $0x58] sm:$0xff]   ;;  %v1726_v45 = vld [vmem:[#allocation7 + $0x30] sm:$0xff]   ;;  %v1468_v53 = vld [vmem:[%s2393_s5] ss:$0 sm:$0xff]  ;;  %s1323_s18 = sshll.u32 %s397_s15, 4  ;;  %vm1307_vm6 = vcmask 523264   ;;  %s1324_s18 = int_to_ptr.vmem [resolvable:$true] %s1323_s18 }
  0x88   : > { %v412_v8 = vrot.slane %v400_v6, 1  ;;  %v1727_v46 = vld [vmem:[#allocation7 + $0x50] sm:$0xff]   ;;  %v1728_v57 = vld [vmem:[#allocation7 + $0x48] sm:$0xff]   ;;  %v1729_v59 = vld [vmem:[#allocation7 + $0x40] sm:$0xff]   ;;  %s1310_s11 = scalar_lea.sflag [#allocation4], %s2214_s20  ;;  %s1906_s24 = scalar_lea.vmem %s1324_s18, 128 }
  0x89   : > { %p1907_p13 = scmp.ne.s32.totalorder %s1324_s18, %s1906_s24  ;;  %p2420_p0 = scmp.ne.s32.totalorder %s2411_s26, 0 }
  0x8a   : > { %1546 = vmatpush3.bf16.msra.mxu0 %v1720_v3  ;;  %1554 = vmatpush3.bf16.msra.mxu1 %v1721_v4 }
  0x8b   : > { %1559 = vmatprep.subr.bf16.mxu0 %v1993_v0  ;;  %1567 = vmatprep.subr.bf16.mxu1 %v1993_v0  ;;  %p1908_p5 = pnand %p1907_p13, %p2420_p0 }
  0x8d   : > { %1548 = vmatmul.mubr.msk.bf16.vlgmr.msra.gmra.mxu0 %vm425_vm1, %v412_v8  ;;  %1556 = vmatmul.mubr.msk.bf16.vlgmr.msra.gmra.mxu1 %vm425_vm1, %v400_v6  ;;  %p1909_p10 = pneg %p1908_p5 }
  0x8e   : > { %1560 = vmatpush3.bf16.msra.mxu0 %v1722_v7  ;;  %1563 = vmatprep.mubr.msk.bf16.mxu0 %vm1994_vm0, %v1993_v0 }
  0x8f   : > { %1561 = vmatprep.subr.bf16.mxu0 %v1993_v0  ;;  %1571 = vmatprep.mubr.msk.bf16.mxu1 %vm1994_vm0, %v1993_v0 }
  0x90   : > { %1568 = vmatpush3.bf16.msra.mxu1 %v1725_v44 }
  0x91   : > { %1569 = vmatprep.subr.bf16.mxu1 %v1993_v0 }
  0x92   : > { %1562 = vmatpush3.bf16.msra.mxu0 %v1723_v9 }
  0x93   : > { %1575 = vmatprep.subr.bf16.mxu0 %v1993_v0 }
  0x94   : > { %1570 = vmatpush3.bf16.msra.mxu1 %v1727_v46 }
  0x95   : > { %1564 = vmatmul.mubr.msk.bf16.vlgmr.msra.gmra.mxu0 %vm425_vm1, %v400_v6  ;;  %1583 = vmatprep.subr.bf16.mxu1 %v1993_v0 }
  0x96   : > { %1579 = vmatprep.mubr.msk.bf16.mxu0 %vm1994_vm0, %v1993_v0  ;;  %1576 = vmatpush3.bf16.msra.mxu0 %v1724_v43 }
  0x97   : > { %1577 = vmatprep.subr.bf16.mxu0 %v1993_v0 }
  0x9a   : > { %1578 = vmatpush3.bf16.msra.mxu0 %v1726_v45 }
  0x9b   : > { %1591 = vmatprep.subr.bf16.mxu0 %v1993_v0 }
 0x14d   : > { %v463_v10 = vpop.f32.mrf.mxu0  ;;  %v522_v11 = vpop.f32.mrf.mxu1 }
 0x14e   : > { %v583_v14 = vrot.slane %v522_v11, 6  ;;  %v529_v19 = vsel %vm528_vm2, %v463_v10, 0.0  ;;  %v1479_v10 = vld [vmem:[%s2391_s3 + $0x1] ss:$0 sm:$0xff] }
 0x14f   : > { %v1549_v12 = vpop.f32.mrf.mxu0  ;;  %v1557_v13 = vpop.f32.mrf.mxu1 }
 0x150   : > { %v586_v20 = vsel %vm585_vm3, 0.0, %v583_v14 }
 0x151   : > { %v466_v15 = vpop.f32.mrf.mxu0  ;;  %v525_v16 = vpop.f32.mrf.mxu1 }
 0x153   : > { %v1550_v17 = vpop.f32.mrf.mxu0  ;;  %v1558_v18 = vpop.f32.mrf.mxu1 }
 0x155   : > { %v576_v21 = vpop.f32.mrf.mxu0 }
 0x156   : > { %v577_v22 = vadd.f32 %v576_v21, %v529_v19 }
 0x157   : > { %v1565_v24 = vpop.f32.mrf.mxu0 }
 0x158   : > { %v587_v25 = vadd.f32 %v586_v20, %v577_v22 }
 0x159   : > { %v579_v26 = vpop.f32.mrf.mxu0 }
 0x15a   : > { %v595_v27 = vadd.f32 %v1465_v23, %v587_v25 }
 0x15b   : > { %v1566_v28 = vpop.f32.mrf.mxu0 }
 0x15c   : > { %v1466_v29 = vmul.f32 -1.442695, %v595_v27 }
 0x15e   : > { %1736 = vpow2.f32 %v1466_v29 }
 0x16b   : > { %v1737_v30 = vpop.eup %1736 }
 0x16c   : > { %v600_v31 = vadd.f32 1.0, %v1737_v30  ;;  %v1730_v30 = vld [vmem:[#allocation7 + $0x78] sm:$0xff]  }
 0x16e   : > { %1738 = vrcp.f32 %v600_v31  ;;  %v1731_v31 = vld [vmem:[#allocation7 + $0x70] sm:$0xff]  }
 0x16f   : > { %1740 = vtanh.f32 %v595_v27 }
 0x17b   : > { %v1739_v32 = vpop.eup %1738 }
 0x17c   : > { %604 = vrot.lane.b32.xlu0 %v1739_v32, %s1995_s22  ;;  %v1741_v33 = vpop.eup %1740 }
 0x1ee   : > { %v605_v34 = vpop.permute.xlu0 %604 }
 0x1ef   : > { %v607_v35 = vmul.f32 %v1741_v33, %v605_v34 }
 0x1f1   : > { %v608_v36 = vadd.f32 %v607_v35, %v399_v5 }
 0x1f3   : > { %v609_v37 = vsel %vm425_vm1, %v608_v36, 0.0 }
 0x1f4   : > { %610 = vadd.xlane.f32.xlu0 %v609_v37 }
 0x27d   : > { %v611_v38 = vpop.xlane.xlu0 %610 }
 0x27e   : > { %v613_v39 = vmul.f32 0.03125, %v611_v38  ;;  %v1483_v38 = vld [vmem:[%s2393_s5 + $0x1] ss:$0 sm:$0xff] }
 0x280   : > { %v614_v40 = vsub.f32 %v608_v36, %v613_v39  ;;  %v1481_v36 = vld [vmem:[#allocation8 + $0x1] ss:$0 sm:$0xff] }
 0x282   : > { %v615_v41 = vmul.f32 %v614_v40, %v614_v40 }
 0x284   : > { %v616_v42 = vsel %vm425_vm1, %v615_v41, 0.0 }
 0x285   : > { %617 = vadd.xlane.f32.xlu1 %v616_v42  ;;  %v1485_v42 = vld [vmem:[%s2391_s3 + $0x2] ss:$0 sm:$0xff] }
 0x30e   : > { %v618_v47 = vpop.xlane.xlu1 %617 }
 0x30f   : > { %v619_v48 = vmul.f32 0.03125, %v618_v47 }
 0x311   : > { %v621_v49 = vadd.f32 1e-12, %v619_v48 }
 0x313   : > { %1742 = vrsqrt.f32 %v621_v49 }
 0x320   : > { %v1743_v50 = vpop.eup %1742 }
 0x321   : > { %v623_v52 = vmul.f32 %v1743_v50, %v614_v40 }
 0x323   : > { %v630_v54 = vmul.f32 %v1467_v51, %v623_v52 }
 0x325   : > { %v638_v55 = vadd.f32 %v1468_v53, %v630_v54 }
 0x327   : > { %v639_v56 = vpack.c.bf16 %v638_v55, %v638_v55 }
 0x329   : > { %1580 = vmatmul.mubr.msk.bf16.vlgmr.msra.gmra.mxu0 %vm425_vm1, %v639_v56  ;;  %v651_v58 = vrot.slane %v639_v56, 2 }
 0x32a   : > { %1595 = vmatprep.mubr.msk.bf16.mxu0 %vm1994_vm0, %v1993_v0  ;;  %1592 = vmatpush3.bf16.msra.mxu0 %v1730_v30 }
 0x32b   : > { %1572 = vmatmul.mubr.msk.bf16.vlgmr.msra.gmra.mxu1 %vm425_vm1, %v651_v58  ;;  %1593 = vmatprep.subr.bf16.mxu0 %v1993_v0 }
 0x32c   : > { %1584 = vmatpush3.bf16.msra.mxu1 %v1728_v57  ;;  %1587 = vmatprep.mubr.msk.bf16.mxu1 %vm1994_vm0, %v1993_v0 }
 0x32d   : > { %1585 = vmatprep.subr.bf16.mxu1 %v1993_v0 }
 0x32e   : > { %1594 = vmatpush3.bf16.msra.mxu0 %v1731_v31  ;;  %v1734_v31 = vld [vmem:[#allocation10 + $0x8] sm:$0xff]  }
 0x32f   : > { %1607 = vmatprep.subr.bf16.mxu0 %v1993_v0 }
 0x330   : > { %1586 = vmatpush3.bf16.msra.mxu1 %v1729_v59 }
 0x331   : > { %1599 = vmatprep.subr.bf16.mxu1 %v1993_v0 }
 0x333   : > { %1588 = vmatmul.mubr.msk.bf16.vlgmr.msra.gmra.mxu1 %vm425_vm1, %v639_v56 }
 0x334   : > { %1603 = vmatprep.mubr.msk.bf16.mxu1 %vm1994_vm0, %v1993_v0 }
 0x3e9   : > { %v761_v60 = vpop.f32.mrf.mxu0 }
 0x3ea   : > { %v822_v4 = vrot.slane %v761_v60, 4 }
 0x3eb   : > { %v701_v61 = vpop.f32.mrf.mxu1  ;;  %v1581_v62 = vpop.f32.mrf.mxu0 }
 0x3ec   : > { %v768_v6 = vsel %vm767_vm4, %v701_v61, 0.0  ;;  %v824_v9 = vsel %vm767_vm4, 0.0, %v822_v4  ;;  %v1732_v62 = vld [vmem:[#allocation7 + $0xa8] sm:$0xff]  }
 0x3ed   : > { %v1573_v63 = vpop.f32.mrf.mxu1  ;;  %v764_v1 = vpop.f32.mrf.mxu0  ;;  %1600 = vmatpush3.bf16.msra.mxu1 %v1732_v62 }
 0x3ee   : > { %v1733_v63 = vld [vmem:[#allocation7 + $0xa0] sm:$0xff]   ;;  %1601 = vmatprep.subr.bf16.mxu1 %v1993_v0 }
 0x3ef   : > { %v704_v2 = vpop.f32.mrf.mxu1  ;;  %v1582_v3 = vpop.f32.mrf.mxu0 }
 0x3f1   : > { %v1574_v5 = vpop.f32.mrf.mxu1  ;;  %1602 = vmatpush3.bf16.msra.mxu1 %v1733_v63 }
 0x3f2   : > { %1615 = vmatprep.subr.bf16.mxu1 %v1993_v0  ;;  %v1490_v5 = vld [vmem:[#allocation8 + $0x2] ss:$0 sm:$0xff] }
 0x3f3   : > { %v815_v7 = vpop.f32.mrf.mxu1 }
 0x3f4   : > { %v816_v8 = vadd.f32 %v815_v7, %v768_v6  ;;  %v1492_v7 = vld [vmem:[%s2393_s5 + $0x2] ss:$0 sm:$0xff] }
 0x3f5   : > { %v1589_v11 = vpop.f32.mrf.mxu1 }
 0x3f6   : > { %v825_v12 = vadd.f32 %v824_v9, %v816_v8  ;;  %v1494_v11 = vld [vmem:[%s2391_s3 + $0x3] ss:$0 sm:$0xff] }
 0x3f7   : > { %v818_v13 = vpop.f32.mrf.mxu1 }
 0x3f8   : > { %v834_v14 = vadd.f32 %v1479_v10, %v825_v12 }
 0x3f9   : > { %v1590_v15 = vpop.f32.mrf.mxu1 }
 0x3fa   : > { %v1480_v16 = vmul.f32 -1.442695, %v834_v14 }
 0x3fc   : > { %1744 = vpow2.f32 %v1480_v16 }
 0x409   : > { %v1745_v17 = vpop.eup %1744 }
 0x40a   : > { %v839_v18 = vadd.f32 1.0, %v1745_v17 }
 0x40c   : > { %1746 = vrcp.f32 %v839_v18 }
 0x40d   : > { %1748 = vtanh.f32 %v834_v14 }
 0x419   : > { %v1747_v19 = vpop.eup %1746 }
 0x41a   : > { %843 = vrot.lane.b32.xlu1 %v1747_v19, %s1995_s22  ;;  %v1749_v20 = vpop.eup %1748 }
 0x48c   : > { %v844_v21 = vpop.permute.xlu1 %843 }
 0x48d   : > { %v846_v22 = vmul.f32 %v1749_v20, %v844_v21 }
 0x48f   : > { %v847_v23 = vadd.f32 %v846_v22, %v638_v55 }
 0x491   : > { %v848_v24 = vsel %vm425_vm1, %v847_v23, 0.0 }
 0x492   : > { %849 = vadd.xlane.f32.xlu1 %v848_v24 }
 0x51b   : > { %v850_v25 = vpop.xlane.xlu1 %849 }
 0x51c   : > { %v851_v26 = vmul.f32 0.03125, %v850_v25 }
 0x51e   : > { %v852_v27 = vsub.f32 %v847_v23, %v851_v26 }
 0x520   : > { %v853_v28 = vmul.f32 %v852_v27, %v852_v27 }
 0x522   : > { %v854_v29 = vsel %vm425_vm1, %v853_v28, 0.0 }
 0x523   : > { %855 = vadd.xlane.f32.xlu0 %v854_v29 }
 0x5ac   : > { %v856_v32 = vpop.xlane.xlu0 %855 }
 0x5ad   : > { %v857_v33 = vmul.f32 0.03125, %v856_v32  ;;  %v1735_v32 = vld [vmem:[#allocation10] sm:$0xff]  }
 0x5af   : > { %v860_v34 = vadd.f32 1e-12, %v857_v33 }
 0x5b1   : > { %1750 = vrsqrt.f32 %v860_v34 }
 0x5be   : > { %v1751_v35 = vpop.eup %1750 }
 0x5bf   : > { %v862_v37 = vmul.f32 %v1751_v35, %v852_v27 }
 0x5c1   : > { %v869_v39 = vmul.f32 %v1481_v36, %v862_v37  ;;  %v1499_v37 = vld [vmem:[#allocation8 + $0x3] ss:$0 sm:$0xff] }
 0x5c3   : > { %v878_v40 = vadd.f32 %v1483_v38, %v869_v39  ;;  %v1501_v39 = vld [vmem:[%s2393_s5 + $0x3] ss:$0 sm:$0xff] }
 0x5c5   : > { %v879_v41 = vpack.c.bf16 %v878_v40, %v878_v40 }
 0x5c7   : > { %1596 = vmatmul.mubr.msk.bf16.vlgmr.msra.gmra.mxu0 %vm425_vm1, %v879_v41 }
 0x5c8   : > { %1611 = vmatprep.mubr.msk.bf16.mxu0 %vm1994_vm0, %v1993_v0  ;;  %1608 = vmatpush3.bf16.msra.mxu0 %v1734_v31 }
 0x5c9   : > { %1609 = vmatprep.subr.bf16.mxu0 %v1993_v0 }
 0x5cc   : > { %1610 = vmatpush3.bf16.msra.mxu0 %v1735_v32 }
 0x5cd   : > { %1621 = vmatprep.subr.bf16.mxu0 %v1993_v0 }
 0x687   : > { %v942_v43 = vpop.f32.mrf.mxu0 }
 0x688   : > { %v943_v44 = vadd.f32 %v1485_v42, %v942_v43  ;;  %v1502_v43 = vld [vmem:[%s2395_s7] ss:$0 sm:$0xff] }
 0x689   : > { %v1597_v45 = vpop.f32.mrf.mxu0 }
 0x68a   : > { %v1489_v46 = vmul.f32 -1.442695, %v943_v44 }
 0x68b   : > { %v945_v47 = vpop.f32.mrf.mxu0 }
 0x68c   : > { %1752 = vpow2.f32 %v1489_v46 }
 0x68d   : > { %v1598_v48 = vpop.f32.mrf.mxu0 }
 0x699   : > { %v1753_v49 = vpop.eup %1752 }
 0x69a   : > { %v952_v50 = vadd.f32 1.0, %v1753_v49 }
 0x69c   : > { %1754 = vrcp.f32 %v952_v50 }
 0x69d   : > { %1756 = vtanh.f32 %v943_v44 }
 0x6a9   : > { %v1755_v51 = vpop.eup %1754 }
 0x6aa   : > { %956 = vrot.lane.b32.xlu0 %v1755_v51, %s1995_s22  ;;  %v1757_v52 = vpop.eup %1756 }
 0x71c   : > { %v957_v53 = vpop.permute.xlu0 %956 }
 0x71d   : > { %v959_v54 = vmul.f32 %v1757_v52, %v957_v53 }
 0x71f   : > { %v960_v55 = vadd.f32 %v959_v54, %v878_v40 }
 0x721   : > { %v961_v56 = vsel %vm425_vm1, %v960_v55, 0.0 }
 0x722   : > { %962 = vadd.xlane.f32.xlu1 %v961_v56  ;;  %v1175_v56 = vld [vmem:[%s349_s4] sm:$0x1]  ;;  %s1997_s4 = smov 32  }
 0x7ab   : > { %v963_v57 = vpop.xlane.xlu1 %962 }
 0x7ac   : > { %v964_v58 = vmul.f32 0.03125, %v963_v57  ;;  %v1176_v57 = vsub.f32 1.0, %v1175_v56 }
 0x7ae   : > { %v965_v59 = vsub.f32 %v960_v55, %v964_v58  ;;  %v1179_v55 = vlaneseq }
 0x7b0   : > { %v966_v60 = vmul.f32 %v965_v59, %v965_v59  ;;  %v1180_v58 = vshrl.u32 %v1179_v55, 7 }
 0x7b2   : > { %v967_v61 = vsel %vm425_vm1, %v966_v60, 0.0  ;;  %v1181_v60 = vsub.s32 0, %v1180_v58 }
 0x7b3   : > { %968 = vadd.xlane.f32.xlu0 %v967_v61 }
 0x83c   : > { %v969_v1 = vpop.xlane.xlu0 %968 }
 0x83d   : > { %v970_v2 = vmul.f32 0.03125, %v969_v1 }
 0x83f   : > { %v973_v3 = vadd.f32 1e-12, %v970_v2 }
 0x841   : > { %1758 = vrsqrt.f32 %v973_v3 }
 0x84e   : > { %v1759_v4 = vpop.eup %1758 }
 0x84f   : > { %v975_v6 = vmul.f32 %v1759_v4, %v965_v59  ;;  %v1177_v59 = vmul.f32 -176776.69, %v1176_v57 }
 0x851   : > { %v982_v8 = vmul.f32 %v1490_v5, %v975_v6  ;;  %v1182_v61 = vrot.slane %v1177_v59, %v1181_v60 }
 0x853   : > { %v991_v9 = vadd.f32 %v1492_v7, %v982_v8 }
 0x855   : > { %v992_v10 = vpack.c.bf16 %v991_v9, %v991_v9 }
 0x857   : > { %1604 = vmatmul.mubr.msk.bf16.vlgmr.msra.gmra.mxu1 %vm425_vm1, %v992_v10 }
 0x858   : > { %1617 = vmatprep.mubr.msk.bf16.mxu1 %vm1994_vm0, %v1993_v0 }
 0x917   : > { %v1055_v12 = vpop.f32.mrf.mxu1 }
 0x918   : > { %v1056_v13 = vadd.f32 %v1494_v11, %v1055_v12 }
 0x919   : > { %v1605_v14 = vpop.f32.mrf.mxu1 }
 0x91a   : > { %v1498_v15 = vmul.f32 -1.442695, %v1056_v13 }
 0x91b   : > { %v1058_v16 = vpop.f32.mrf.mxu1 }
 0x91c   : > { %1760 = vpow2.f32 %v1498_v15 }
 0x91d   : > { %v1606_v17 = vpop.f32.mrf.mxu1 }
 0x929   : > { %v1761_v18 = vpop.eup %1760 }
 0x92a   : > { %v1065_v19 = vadd.f32 1.0, %v1761_v18 }
 0x92c   : > { %1762 = vrcp.f32 %v1065_v19 }
 0x92d   : > { %1764 = vtanh.f32 %v1056_v13 }
 0x939   : > { %v1763_v20 = vpop.eup %1762 }
 0x93a   : > { %1069 = vrot.lane.b32.xlu1 %v1763_v20, %s1995_s22  ;;  %v1765_v21 = vpop.eup %1764 }
 0x9ac   : > { %v1070_v22 = vpop.permute.xlu1 %1069 }
 0x9ad   : > { %v1072_v23 = vmul.f32 %v1765_v21, %v1070_v22 }
 0x9af   : > { %v1073_v24 = vadd.f32 %v1072_v23, %v991_v9 }
 0x9b1   : > { %v1074_v25 = vsel %vm425_vm1, %v1073_v24, 0.0 }
 0x9b2   : > { %1075 = vadd.xlane.f32.xlu1 %v1074_v25 }
 0xa3b   : > { %v1076_v26 = vpop.xlane.xlu1 %1075 }
 0xa3c   : > { %v1077_v27 = vmul.f32 0.03125, %v1076_v26 }
 0xa3e   : > { %v1078_v28 = vsub.f32 %v1073_v24, %v1077_v27 }
 0xa40   : > { %v1079_v29 = vmul.f32 %v1078_v28, %v1078_v28 }
 0xa42   : > { %v1080_v30 = vsel %vm425_vm1, %v1079_v29, 0.0 }
 0xa43   : > { %1081 = vadd.xlane.f32.xlu0 %v1080_v30 }
 0xacc   : > { %v1082_v33 = vpop.xlane.xlu0 %1081 }
 0xacd   : > { %v1083_v34 = vmul.f32 0.03125, %v1082_v33 }
 0xacf   : > { %v1086_v35 = vadd.f32 1e-12, %v1083_v34 }
 0xad1   : > { %1766 = vrsqrt.f32 %v1086_v35 }
 0xade   : > { %v1767_v36 = vpop.eup %1766 }
 0xadf   : > { %v1088_v38 = vmul.f32 %v1767_v36, %v1078_v28 }
 0xae1   : > { %v1095_v40 = vmul.f32 %v1499_v37, %v1088_v38 }
 0xae3   : > { %v2324_v41 = vadd.f32 %v1501_v39, %v1095_v40 }
 0xae5   : > { %v1105_v42 = vpack.c.bf16 %v2324_v41, %v2324_v41 }
 0xae7   : > { %1612 = vmatmul.mubr.msk.bf16.vlgmr.msra.gmra.mxu0 %vm425_vm1, %v1105_v42 }
 0xae8   : > { %1623 = vmatprep.mubr.msk.bf16.mxu0 %vm1994_vm0, %v1993_v0 }
 0xba7   : > { %v1166_v44 = vpop.f32.mrf.mxu0 }
 0xba8   : > { %v1167_v45 = vadd.f32 %v1502_v43, %v1166_v44 }
 0xba9   : > { %v1613_v46 = vpop.f32.mrf.mxu0 }
 0xbaa   : > { %v1174_v47 = vpack.c.bf16 %v1167_v45, %v1167_v45  ;;  %v1172_v53 = vmul.f32 0.17677669, %v1167_v45 }
 0xbab   : > { %v1169_v48 = vpop.f32.mrf.mxu0 }
 0xbac   : > { %1254 = vrot.lane.b32.xlu1 %v1174_v47, %s1996_s6  ;;  %1185 = vrot.lane.b32.xlu0 %v1174_v47, %s1995_s22  ;;  %v1173_v54 = vpack.c.bf16 %v1172_v53, %v1172_v53  ;;  %s1509_s22 = sshll.u32 %s2065_s9, 7  ;;  %s1998_s9 = smov [#allocation11]  }
 0xbad   : > { %v1614_v49 = vpop.f32.mrf.mxu0  ;;  %s2349_s23 = scalar_lea.hbm %s2396_s8, %s1509_s22  ;;  %s1910_s17 = sshll.u32 %s1998_s9, 4  ;;  %s1911_s17 = int_to_ptr.vmem [resolvable:$false] %s1910_s17 }
 0xbae   : > { %s1912_s2 = scalar_lea.vmem %s1911_s17, 256  ;;  %p1913_p11 = scmp.lt.s32.totalorder %s1324_s18, %s1911_s17 }
 0xbaf   : > { %p1914_p9 = scmp.lt.s32.totalorder %s1912_s2, %s1906_s24 }
 0xbb1   : > { %p1915_p1 = por %p1914_p9, %p1913_p11 }
 0xbb3   : > { %p1916_p4 = pnand %p1915_p1, %p1909_p10 }
 0xc1e   : > { %v1255_v50 = vpop.permute.xlu1 %1254  ;;  %v1186_v51 = vpop.permute.xlu0 %1185 }
 0xc1f   : > { %v1260_v52 = vsel %vm767_vm4, %v1255_v50, 0  ;;  %v1191_v0 = vsel %vm425_vm1, %v1186_v51, 0 }
 0xc20   : > { %1616 = vmatpush3.bf16.xpose.msra.mxu1 %v1191_v0  ;;  %1622 = vmatpush3.bf16.msra.mxu0 %v1260_v52 }
 0xc27   : > { %1618 = vmatmul.mubr.msk.bf16.vlgmr.msra.gmra.mxu1 %vm425_vm1, %v1173_v54 }
 0xce7   : > { %v1227_v62 = vpop.f32.mrf.mxu1 }
 0xce8   : > { %v1228_v63 = vadd.f32 %v1227_v62, %v1182_v61 }
 0xce9   : > { %v1619_v1 = vpop.f32.mrf.mxu1 }
 0xcea   : > { %v1234_v2 = vsel %vm1233_vm5, %v1228_v63, -inf }
 0xceb   : > { %v1235_v3 = vrot.slane %v1234_v2, 4  ;;  %v1230_v4 = vpop.f32.mrf.mxu1 }
 0xced   : > { %v1236_v5 = vmax.f32 %v1234_v2, %v1235_v3  ;;  %v1620_v6 = vpop.f32.mrf.mxu1 }
 0xcef   : > { %v1237_v7 = vrot.slane %v1236_v5, 2 }
 0xcf1   : > { %v1238_v8 = vmax.f32 %v1236_v5, %v1237_v7 }
 0xcf3   : > { %v1239_v9 = vrot.slane %v1238_v8, 1 }
 0xcf5   : > { %v1240_v10 = vmax.f32 %v1238_v8, %v1239_v9 }
 0xcf7   : > { %v1241_v11 = vsub.f32 %v1228_v63, %v1240_v10 }
 0xcf9   : > { %v1242_v12 = vmul.f32 1.442695, %v1241_v11 }
 0xcfb   : > { %1768 = vpow2.f32 %v1242_v12 }
 0xd08   : > { %v1769_v13 = vpop.eup %1768 }
 0xd09   : > { %v1244_v14 = vsel %vm1233_vm5, %v1769_v13, 0.0 }
 0xd0a   : > { %v1245_v15 = vrot.slane %v1244_v14, 4 }
 0xd0c   : > { %v1246_v16 = vadd.f32 %v1245_v15, %v1244_v14 }
 0xd0e   : > { %v1247_v17 = vrot.slane %v1246_v16, 2 }
 0xd10   : > { %v1248_v18 = vadd.f32 %v1247_v17, %v1246_v16 }
 0xd12   : > { %v1249_v19 = vrot.slane %v1248_v18, 1 }
 0xd14   : > { %v1250_v20 = vadd.f32 %v1249_v19, %v1248_v18 }
 0xd16   : > { %1770 = vrcp.f32 %v1250_v20 }
 0xd23   : > { %v1771_v21 = vpop.eup %1770 }
 0xd24   : > { %v1252_v22 = vmul.f32 %v1771_v21, %v1769_v13 }
 0xd26   : > { %v1253_v23 = vpack.c.bf16 %v1252_v22, %v1252_v22 }
 0xd28   : > { %1624 = vmatmul.mubr.msk.bf16.vlgmr.msra.gmra.mxu0 %vm1233_vm5, %v1253_v23 }
 0xde8   : > { %v1296_v24 = vpop.f32.mrf.mxu0 }
 0xde9   : > { %1303 = vrot.lane.b32.xlu0 %v1296_v24, %s1997_s4 }
 0xdea   : > { %v1625_v25 = vpop.f32.mrf.mxu0 }
 0xdec   : > { %v1299_v26 = vpop.f32.mrf.mxu0 }
 0xdee   : > { %v1626_v27 = vpop.f32.mrf.mxu0 }
 0xe5b   : > { %v1304_v28 = vpop.permute.xlu0 %1303 }
 0xe5c   : > { %v1306_v29 = vsel %vm425_vm1, %v2324_v41, %v1304_v28 }
 0xe5d   : > { %1308 = vst.msk [vmem:[%s397_s15] sm:$0xff] %vm1307_vm6, %v1306_v29 }
 0xe5e   : > { %1919 = shalt.err (!%p1916_p4)
}
 0xe5f   : > { %s1920_s21 = scalar_lea.hbm %s2349_s23, 128  ;;  %s1924_s14 = scalar_lea.hbm %s2396_s8, 256 }
 0xe60   : > { %p1921_p6 = scmp.ne.s32.totalorder %s2349_s23, %s1920_s21  ;;  %p1925_p8 = scmp.lt.s32.totalorder %s2349_s23, %s2396_s8 }
 0xe61   : > { %p1926_p3 = scmp.lt.s32.totalorder %s1924_s14, %s1920_s21 }
 0xe62   : > { %p1922_p7 = pnand %p1921_p6, %p2420_p0 }
 0xe63   : > { %p1927_p12 = por %p1926_p3, %p1925_p8 }
 0xe64   : > { %p1923_p2 = pneg %p1922_p7 }
 0xe66   : > { %p1928_p13 = pnand %p1927_p12, %p1923_p2 }
 0xe68   : > { %1931 = shalt.err (!%p1928_p13)
}
 0xe69   : > { %1643 = dma.vmem_to_hbm [thread:$0]  (%p2420_p0), %s1324_s18, 128, %s2349_s23, %s1310_s11  }
 0xe6a PF: > { %s1335_s22 = sand.u32 1, %s1970_s27   ;;  %p2421_p5 = scmp.ne.s32.totalorder %s2405_s12, 0 }
 0xe6b   : > { %p2422_p10 = scmp.ge.s32.totalorder %s1982_s30, 2  ;;  %s1336_s15 = scalar_lea.sflag [#allocation4], %s1335_s22 }
 0xe6d   : > { %p1663_p11 = pnand %p2422_p10, %p2421_p5 }
 0xe6f   : > { %p1664_p9 = pneg %p1663_p11 }
 0xe71   : > { %1965 = dma.done.wait (%p1664_p9), %s1336_s15, 128  }
 0xe72   : > { %1967 = vsyncadd (%p1664_p9), %s1336_s15, 4294967168  ;;  %p25_p1 = scmp.ge.s32.totalorder %s2119_s19, 4   ;;  %s2423_s27 = smov %s1974_s28 }
 0xe73   : > { %s2424_s28 = smov %s1978_s29  ;;  %s2425_s29 = smov %s2140_s25 }
 0xe74   : > { %s2426_s30 = smov %s2119_s19  ;;  %27 = sbr.rel (!%p25_p1) target bundleno = 12 (0xc), region = 138 }
 0xe79   :  { %1341 = vsyncpa [#allocation3], 1 }
 0xe7a   :  { %1343 = vsyncpa [#allocation3 + $0x1], 1 }
 0xe7b   :  { %1344 = vsyncpa [#allocation6], 1 }
 0xe7c   :  { %1346 = vsyncpa [#allocation6 + $0x1], 1 }
 0xe7d   :  { %1347 = vsyncpa [#allocation9], 1 }
 0xe7e   :  { %1348 = vsyncpa [#allocation4], 1 }
 0xe7f   :  { %1350 = vsyncpa [#allocation4 + $0x1], 1 }

</bundles_post_ra>
